<compile_context>
chip_gen: v7x
topology: tpu7x:2x2x1
jax: 0.10.0
libtpu: 0.0.40
codegen_flags: <defaults>
</compile_context>

<pallas_src>
import jax
import jax.numpy as jnp
from jax.experimental import pallas as pl
from jax.experimental.pallas import tpu as pltpu

# ---- architecture hyper-parameters (small, TPU-demo sized) -----------------
C_IN = 4          # input channels
F_CONV = 8        # conv feature channels
KSIZE = 3         # conv kernel
HIDDEN = 32       # hidden width of the MLP heads
N_CLASSES = 10    # label-classifier output
N_DOMAINS = 2     # domain-classifier output

LANE = 128        # lane-dense packed-output width (unmasked vst)
DOM_OFF = 64      # domain logits occupy lanes [DOM_OFF, DOM_OFF + N_DOMAINS)
HEAD2_IN = 2 * HIDDEN


# ---------------------------- Pallas kernel ---------------------------------
def dann_kernel(cols_ref, wc_ref, wh1_ref, wh2_ref, bias_ref, out_ref, feat_acc):
    """Grid axis = samples. Each step: conv one sample's im2col rows, pool it
    into the resident (N, F_CONV) scratch; on the last step run the fused
    label/domain heads and emit one lane-dense (N, 128) logits slab."""
    s = pl.program_id(0)
    n_s = pl.num_programs(0)

    # feature extractor: 3x3 conv as one im2col matmul + bias + ReLU
    bc = bias_ref[0:1, 0:F_CONV]                                    # (1, F)
    conv = jnp.dot(cols_ref[...], wc_ref[...],
                   preferred_element_type=jnp.float32) + bc
    act = jnp.maximum(conv, 0.0)                                    # (H*W, F)

    # global average pool: sublane reduction (VPU/XLU), no MXU padding,
    # no pooling matrix input.
    inv_hw = 1.0 / act.shape[0]
    pooled = jnp.sum(act, axis=0, keepdims=True) * inv_hw           # (1, F)

    # stash this sample's pooled features in the grid-resident accumulator
    row_ids = jax.lax.broadcasted_iota(jnp.int32, feat_acc.shape, 0)
    feat_acc[...] = jnp.where(row_ids == s, pooled, feat_acc[...])

    # fused label + domain heads, computed once, single lane-dense store.
    # TODO(synk): the gradient-reversal layer is forward-identity; only a
    # future custom_vjp for training would need the sign flip on the domain
    # branch.
    @pl.when(s == n_s - 1)
    def _():
        feat = feat_acc[...]                                        # (N, F)
        bh1 = bias_ref[1:2, 0:HEAD2_IN]                             # (1, 2H)
        h = jnp.maximum(jnp.dot(feat, wh1_ref[...],
                                preferred_element_type=jnp.float32) + bh1, 0.0)
        bh2 = bias_ref[2:3, :]                                      # (1, LANE)
        out_ref[...] = jnp.dot(h, wh2_ref[...],
                               preferred_element_type=jnp.float32) + bh2


# ------------------------------ glue (plain JAX) ----------------------------
def _im2col_nhwc(x_nhwc, k=KSIZE, pad=1):
    B, H, W, C = x_nhwc.shape
    xp = jnp.pad(x_nhwc, ((0, 0), (pad, pad), (pad, pad), (0, 0)))
    patches = []
    for kh in range(k):
        for kw in range(k):
            patches.append(xp[:, kh:kh + H, kw:kw + W, :])
    cols = jnp.concatenate(patches, axis=-1)          # (B,H,W,k*k*C), (kh,kw,c)
    return cols.reshape(B * H * W, k * k * C)


def _pack_heads(params):
    """Fuse the label and domain heads into lane-dense weights + one bias slab."""
    wh1 = jnp.concatenate([params["w1"], params["wd1"]], axis=1)       # (F, 2H)

    wh2 = jnp.zeros((HEAD2_IN, LANE), jnp.float32)
    wh2 = wh2.at[:HIDDEN, :N_CLASSES].set(params["w2"])
    wh2 = wh2.at[HIDDEN:, DOM_OFF:DOM_OFF + N_DOMAINS].set(params["wd2"])

    bias = jnp.zeros((8, LANE), jnp.float32)
    bias = bias.at[0, :F_CONV].set(params["bc"][0])
    bias = bias.at[1, :HIDDEN].set(params["b1"][0])
    bias = bias.at[1, HIDDEN:HEAD2_IN].set(params["bd1"][0])
    bias = bias.at[2, :N_CLASSES].set(params["b2"][0])
    bias = bias.at[2, DOM_OFF:DOM_OFF + N_DOMAINS].set(params["bd2"][0])
    return wh1, wh2, bias


def dann_architecture_pallas(params, x_nchw):
    """One call of the wrapped DANN architecture -> (class_logits, domain_logits)."""
    N, C, H, W = x_nchw.shape
    x_nhwc = jnp.transpose(x_nchw, (0, 2, 3, 1)).astype(jnp.float32)
    # TODO(synk): im2col is materialized in plain JAX (9x read amplification);
    # an in-kernel halo/shift gather would avoid it on bandwidth-limited chips.
    cols = _im2col_nhwc(x_nhwc)                                        # (N*H*W, 9*C)
    kkc = cols.shape[1]
    wh1, wh2, bias = _pack_heads(params)

    out = pl.pallas_call(
        dann_kernel,
        out_shape=jax.ShapeDtypeStruct((N, LANE), jnp.float32),
        grid_spec=pltpu.PrefetchScalarGridSpec(
            num_scalar_prefetch=0,
            grid=(N,),                                # one sample (H*W rows) per step
            in_specs=[
                pl.BlockSpec((H * W, kkc), lambda s: (s, 0)),       # cols row-tile
                pl.BlockSpec((kkc, F_CONV), lambda s: (0, 0)),      # conv weight
                pl.BlockSpec((F_CONV, HEAD2_IN), lambda s: (0, 0)), # fused head 1
                pl.BlockSpec((HEAD2_IN, LANE), lambda s: (0, 0)),   # fused head 2
                pl.BlockSpec((8, LANE), lambda s: (0, 0)),          # packed biases
            ],
            out_specs=pl.BlockSpec((N, LANE), lambda s: (0, 0)),    # lane-dense slab
            scratch_shapes=[pltpu.VMEM((N, F_CONV), jnp.float32)],  # pooled features
        ),
        compiler_params=pltpu.CompilerParams(
            dimension_semantics=("arbitrary",),       # output/accumulator resident
            vmem_limit_bytes=32 * 1024 * 1024,
        ),
    )(cols, params["wc"], wh1, wh2, bias)

    cls = out[:, :N_CLASSES]
    dom = out[:, DOM_OFF:DOM_OFF + N_DOMAINS]
    return cls, dom


def train_wrapper_forward(params, source, target):
    """TrainWrapper.forward: (*architecture(source), *architecture(target, 'target')).

    Source and target share the architecture weights, so both batches go
    through a single Pallas launch (concatenated on the batch axis) and the
    logits are split afterwards.
    """
    B = source.shape[0]
    x = jnp.concatenate([source, target], axis=0)                      # (2B, C, H, W)
    cls, dom = dann_architecture_pallas(params, x)
    return cls[:B], dom[:B], cls[B:], dom[B:]


# ------------------------- deterministic parameter init ---------------------
def init_params(key):
    ks = jax.random.split(key, 10)

    def dense(k, fan_in, shape):
        return jax.random.normal(k, shape, jnp.float32) / jnp.sqrt(jnp.float32(fan_in))

    return dict(
        # conv weight stored as (k*k*C_in, F) rows in (kh, kw, c) order
        wc=dense(ks[0], KSIZE * KSIZE * C_IN, (KSIZE * KSIZE * C_IN, F_CONV)),
        bc=0.01 * jax.random.normal(ks[1], (1, F_CONV), jnp.float32),
        w1=dense(ks[2], F_CONV, (F_CONV, HIDDEN)),
        b1=0.01 * jax.random.normal(ks[3], (1, HIDDEN), jnp.float32),
        w2=dense(ks[4], HIDDEN, (HIDDEN, N_CLASSES)),
        b2=0.01 * jax.random.normal(ks[5], (1, N_CLASSES), jnp.float32),
        wd1=dense(ks[6], F_CONV, (F_CONV, HIDDEN)),
        bd1=0.01 * jax.random.normal(ks[7], (1, HIDDEN), jnp.float32),
        wd2=dense(ks[8], HIDDEN, (HIDDEN, N_DOMAINS)),
        bd2=0.01 * jax.random.normal(ks[9], (1, N_DOMAINS), jnp.float32),
    )


# --------------------------- pure-JAX reference ------------------------------
def reference_forward(params, source, target):
    def arch(x_nchw):
        x = jnp.transpose(x_nchw, (0, 2, 3, 1)).astype(jnp.float32)
        wconv = params["wc"].reshape(KSIZE, KSIZE, C_IN, F_CONV)        # HWIO
        y = jax.lax.conv_general_dilated(
            x, wconv, window_strides=(1, 1), padding="SAME",
            dimension_numbers=("NHWC", "HWIO", "NHWC"))
        y = jnp.maximum(y + params["bc"].reshape(1, 1, 1, -1), 0.0)
        feat = jnp.mean(y, axis=(1, 2))
        h = jnp.maximum(feat @ params["w1"] + params["b1"], 0.0)
        cls = h @ params["w2"] + params["b2"]
        hd = jnp.maximum(feat @ params["wd1"] + params["bd1"], 0.0)
        dom = hd @ params["wd2"] + params["bd2"]
        return cls, dom

    return (*arch(source), *arch(target))


# ----------------------------------- main ------------------------------------
if __name__ == "__main__":
    key = jax.random.PRNGKey(0)
    kp, ks, kt = jax.random.split(key, 3)
    params = init_params(kp)

    source = jax.random.normal(ks, (2, C_IN, 16, 16), jnp.float32)
    target = jax.random.normal(kt, (2, C_IN, 16, 16), jnp.float32)

    fwd = jax.jit(train_wrapper_forward)
    outs = fwd(params, source, target)
    outs = jax.block_until_ready(outs)

    refs = reference_forward(params, source, target)
    assert len(outs) == 4
    for o, r in zip(outs, refs):
        assert o.shape == r.shape, (o.shape, r.shape)
        assert jnp.allclose(o, r, atol=1e-4, rtol=1e-4), "mismatch vs reference"

    print("KERNEL_OK")
</pallas_src>

<mosaic_0001>
module attributes {stable_mosaic.version = 11 : i64} {
  func.func @dann_kernel(%arg0: i32, %arg1: memref<256x36xf32, #tpu.memory_space<vmem>>, %arg2: memref<36x8xf32, #tpu.memory_space<vmem>>, %arg3: memref<8x64xf32, #tpu.memory_space<vmem>>, %arg4: memref<64x128xf32, #tpu.memory_space<vmem>>, %arg5: memref<8x128xf32, #tpu.memory_space<vmem>>, %arg6: memref<4x128xf32, #tpu.memory_space<vmem>>, %arg7: memref<4x8xf32, #tpu.memory_space<vmem>>) attributes {dimension_semantics = [#tpu.dimension_semantics<arbitrary>], iteration_bounds = array<i64: 4>, scalar_prefetch = 0 : i64, scratch_operands = 1 : i64, tpu.core_type = #tpu.core_type<tc>, window_params = [{transform_indices = @transform_0, window_bounds = array<i64: 256, 36>}, {pipeline_mode = #tpu.pipeline_mode<synchronous>, transform_indices = @transform_1, window_bounds = array<i64: 36, 8>}, {pipeline_mode = #tpu.pipeline_mode<synchronous>, transform_indices = @transform_2, window_bounds = array<i64: 8, 64>}, {pipeline_mode = #tpu.pipeline_mode<synchronous>, transform_indices = @transform_3, window_bounds = array<i64: 64, 128>}, {pipeline_mode = #tpu.pipeline_mode<synchronous>, transform_indices = @transform_4, window_bounds = array<i64: 8, 128>}, {pipeline_mode = #tpu.pipeline_mode<synchronous>, transform_indices = @transform_5, window_bounds = array<i64: 4, 128>}]} {
    %c0 = arith.constant 0 : index
    %c0_0 = arith.constant 0 : index
    %0 = vector.load %arg5[%c0, %c0_0] : memref<8x128xf32, #tpu.memory_space<vmem>>, vector<1x8xf32>
    %c0_1 = arith.constant 0 : index
    %c0_2 = arith.constant 0 : index
    %1 = vector.load %arg1[%c0_1, %c0_2] : memref<256x36xf32, #tpu.memory_space<vmem>>, vector<256x36xf32>
    %c0_3 = arith.constant 0 : index
    %c0_4 = arith.constant 0 : index
    %2 = vector.load %arg2[%c0_3, %c0_4] : memref<36x8xf32, #tpu.memory_space<vmem>>, vector<36x8xf32>
    %cst = arith.constant dense<0.000000e+00> : vector<256x8xf32>
    %3 = tpu.matmul %1, %2, %cst {dimension_numbers = #tpu.dot_dimension_numbers<[1], [0], [0], [1], [0, 0, 1, 1], [], []>} : vector<256x36xf32>, vector<36x8xf32>, vector<256x8xf32> -> vector<256x8xf32>
    %4 = vector.broadcast %0 : vector<1x8xf32> to vector<256x8xf32>
    %5 = arith.addf %3, %4 : vector<256x8xf32>
    %cst_5 = arith.constant 0.000000e+00 : f32
    %6 = vector.broadcast %cst_5 : f32 to vector<256x8xf32>
    %7 = arith.maximumf %5, %6 : vector<256x8xf32>
    %cst_6 = arith.constant dense<0.000000e+00> : vector<8xf32>
    %8 = vector.multi_reduction <add>, %7, %cst_6 [0] : vector<256x8xf32> to vector<8xf32>
    %9 = vector.shape_cast %8 : vector<8xf32> to vector<1x8xf32>
    %cst_7 = arith.constant 3.906250e-03 : f32
    %10 = vector.broadcast %cst_7 : f32 to vector<1x8xf32>
    %11 = arith.mulf %9, %10 : vector<1x8xf32>
    %12 = tpu.iota {dimensions = array<i32: 0>} : vector<4x8xi32>
    %13 = vector.broadcast %arg0 : i32 to vector<4x8xi32>
    %14 = arith.cmpi eq, %12, %13 : vector<4x8xi32>
    %c0_8 = arith.constant 0 : index
    %c0_9 = arith.constant 0 : index
    %15 = vector.load %arg7[%c0_8, %c0_9] : memref<4x8xf32, #tpu.memory_space<vmem>>, vector<4x8xf32>
    %16 = vector.shape_cast %11 : vector<1x8xf32> to vector<1x8xf32>
    %17 = vector.broadcast %16 : vector<1x8xf32> to vector<4x8xf32>
    %18 = arith.select %14, %17, %15 : vector<4x8xi1>, vector<4x8xf32>
    %c0_10 = arith.constant 0 : index
    %c0_11 = arith.constant 0 : index
    %19 = vector.load %arg7[%c0_10, %c0_11] : memref<4x8xf32, #tpu.memory_space<vmem>>, vector<4x8xf32>
    tpu.vector_store %arg7[%c0_10, %c0_11], %18 {strides = array<i32>} : memref<4x8xf32, #tpu.memory_space<vmem>>, vector<4x8xf32>,
    %c3_i32 = arith.constant 3 : i32
    %20 = arith.cmpi eq, %arg0, %c3_i32 : i32
    %21 = arith.extui %20 : i1 to i32
    %c0_i32 = arith.constant 0 : i32
    %22 = arith.cmpi ne, %21, %c0_i32 : i32
    scf.if %22 {
      %c0_12 = arith.constant 0 : index
      %c0_13 = arith.constant 0 : index
      %23 = vector.load %arg7[%c0_12, %c0_13] : memref<4x8xf32, #tpu.memory_space<vmem>>, vector<4x8xf32>
      %c1 = arith.constant 1 : index
      %c0_14 = arith.constant 0 : index
      %24 = vector.load %arg5[%c1, %c0_14] : memref<8x128xf32, #tpu.memory_space<vmem>>, vector<1x64xf32>
      %c0_15 = arith.constant 0 : index
      %c0_16 = arith.constant 0 : index
      %25 = vector.load %arg3[%c0_15, %c0_16] : memref<8x64xf32, #tpu.memory_space<vmem>>, vector<8x64xf32>
      %cst_17 = arith.constant dense<0.000000e+00> : vector<4x64xf32>
      %26 = tpu.matmul %23, %25, %cst_17 {dimension_numbers = #tpu.dot_dimension_numbers<[1], [0], [0], [1], [0, 0, 1, 1], [], []>} : vector<4x8xf32>, vector<8x64xf32>, vector<4x64xf32> -> vector<4x64xf32>
      %27 = vector.broadcast %24 : vector<1x64xf32> to vector<4x64xf32>
      %28 = arith.addf %26, %27 : vector<4x64xf32>
      %cst_18 = arith.constant 0.000000e+00 : f32
      %29 = vector.broadcast %cst_18 : f32 to vector<4x64xf32>
      %30 = arith.maximumf %28, %29 : vector<4x64xf32>
      %c2 = arith.constant 2 : index
      %c0_19 = arith.constant 0 : index
      %31 = vector.load %arg5[%c2, %c0_19] : memref<8x128xf32, #tpu.memory_space<vmem>>, vector<1x128xf32>
      %c0_20 = arith.constant 0 : index
      %c0_21 = arith.constant 0 : index
      %32 = vector.load %arg4[%c0_20, %c0_21] : memref<64x128xf32, #tpu.memory_space<vmem>>, vector<64x128xf32>
      %cst_22 = arith.constant dense<0.000000e+00> : vector<4x128xf32>
      %33 = tpu.matmul %30, %32, %cst_22 {dimension_numbers = #tpu.dot_dimension_numbers<[1], [0], [0], [1], [0, 0, 1, 1], [], []>} : vector<4x64xf32>, vector<64x128xf32>, vector<4x128xf32> -> vector<4x128xf32>
      %34 = vector.broadcast %31 : vector<1x128xf32> to vector<4x128xf32>
      %35 = arith.addf %33, %34 : vector<4x128xf32>
      %c0_23 = arith.constant 0 : index
      %c0_24 = arith.constant 0 : index
      %36 = vector.load %arg6[%c0_23, %c0_24] : memref<4x128xf32, #tpu.memory_space<vmem>>, vector<4x128xf32>
      tpu.vector_store %arg6[%c0_23, %c0_24], %35 {strides = array<i32>} : memref<4x128xf32, #tpu.memory_space<vmem>>, vector<4x128xf32>,
    } else {
    }
    return
  }
  func.func @transform_0(%arg0: i32) -> (i32, i32) {
    %c0_i32 = arith.constant 0 : i32
    %c0_i32_0 = arith.constant 0 : i32
    return %arg0, %c0_i32 : i32, i32
  }
  func.func @transform_1(%arg0: i32) -> (i32, i32) {
    %c0_i32 = arith.constant 0 : i32
    %c0_i32_0 = arith.constant 0 : i32
    %c0_i32_1 = arith.constant 0 : i32
    return %c0_i32, %c0_i32_0 : i32, i32
  }
  func.func @transform_2(%arg0: i32) -> (i32, i32) {
    %c0_i32 = arith.constant 0 : i32
    %c0_i32_0 = arith.constant 0 : i32
    %c0_i32_1 = arith.constant 0 : i32
    return %c0_i32, %c0_i32_0 : i32, i32
  }
  func.func @transform_3(%arg0: i32) -> (i32, i32) {
    %c0_i32 = arith.constant 0 : i32
    %c0_i32_0 = arith.constant 0 : i32
    %c0_i32_1 = arith.constant 0 : i32
    return %c0_i32, %c0_i32_0 : i32, i32
  }
  func.func @transform_4(%arg0: i32) -> (i32, i32) {
    %c0_i32 = arith.constant 0 : i32
    %c0_i32_0 = arith.constant 0 : i32
    %c0_i32_1 = arith.constant 0 : i32
    return %c0_i32, %c0_i32_0 : i32, i32
  }
  func.func @transform_5(%arg0: i32) -> (i32, i32) {
    %c0_i32 = arith.constant 0 : i32
    %c0_i32_0 = arith.constant 0 : i32
    %c0_i32_1 = arith.constant 0 : i32
    return %c0_i32, %c0_i32_0 : i32, i32
  }
}

</mosaic_0001>

<bundles_post_ra>
// kernel: train_wrapper_forward.1
= control target key start
LH: loop header
LB: loop body
LE: loop exit
PB: predicated region body
PF: predicated region fallthrough
CT: control target
= control target key end

     0   :  { %s1147_s18 = smov 0   ;;  %s1395_s0 = inlined_call_operand.vmem [shape: f32[1024,36], index: 0, kind: input, shape index: {}]   ;;  %s1396_s1 = inlined_call_operand.vmem [shape: f32[36,8], index: 1, kind: input, shape index: {}]   ;;  %s1397_s2 = inlined_call_operand.vmem [shape: f32[8,64], index: 2, kind: input, shape index: {}]   ;;  %s1398_s3 = inlined_call_operand.vmem [shape: f32[64,128], index: 3, kind: input, shape index: {}]   ;;  %s1399_s4 = inlined_call_operand.vmem [shape: f32[8,128], index: 4, kind: input, shape index: {}]   ;;  %s1400_s5 = inlined_call_operand.vmem [shape: f32[4,128], index: 5, kind: output, shape index: {}]  }
   0x1 LB: > { %s1153_s19 = sadd.s32 4294967295, %s1112_s18   ;;  %p895_p0 = scmp.ge.s32.totalorder %s1112_s18, 1  ;;  %s1112_s18 = sphi %s1147_s18, %s15_s18  }
   0x2   : > { %p183_p1 = scmp.lt.s32.totalorder %s1112_s18, 5 }
   0x4   : > { %p184_p2 = pnand %p895_p0, %p183_p1 }
   0x5   : > { %v245_v0 = vld [vmem:[%s1396_s1] sm:$0xff] (!%p184_p2)  ;;  %v246_v1 = vld [vmem:[%s1396_s1 + $0x8] sm:$0xff] (!%p184_p2)  ;;  %v247_v2 = vld [vmem:[%s1396_s1 + $0x10] sm:$0xff] (!%p184_p2)  ;;  %s896_s26 = sshll.u32 (!%p184_p2), %s1153_s19, 5  ;;  %vm254_vm0 = vcmask (!%p184_p2), 293888   ;;  %vm351_vm1 = vcmask (!%p184_p2), 1043456  }
   0x6   : > { %187 = sbr.rel (%p184_p2) target bundleno = 754 (0x2f2), region = 40  ;;  %v1069_v3 = vpack.c.bf16 (!%p184_p2), %v246_v1, %v245_v0  ;;  %v248_v4 = vld [vmem:[%s1396_s1 + $0x18] sm:$0xff] (!%p184_p2)  ;;  %p207_p3 = scmp.lt.s32.totalorder (!%p184_p2), %s896_s26, 127  ;;  %v249_v6 = vld [vmem:[%s1396_s1 + $0x20] sm:$0xf] (!%p184_p2)  ;;  %vm612_vm2 = vcmask (!%p184_p2), 64512  }
   0x7   : > { %v1073_v5 = vpack.c.bf16 (!%p184_p2), %v248_v4, %v247_v2  ;;  %v1245_v39 = vld [vmem:[%s1399_s4] ss:$0 sm:$0xff] (!%p184_p2)  ;;  %vm689_vm4 = vcmask (!%p184_p2), 60416   ;;  %p932_p4 = scmp.ne.s32.totalorder (!%p184_p2), %s1153_s19, 3 }
   0x8   : > { %1070 = vmatprep.subr.bf16.mxu0 (!%p184_p2), %v1069_v3  ;;  %1089 = vmatprep.subr.bf16.mxu1 (!%p184_p2), %v1069_v3 }
   0x9   : > { %1072 = vmatpush3.bf16.msra.mxu0 (!%p184_p2), %v1069_v3  ;;  %1092 = vmatpush3.bf16.msra.mxu1 (!%p184_p2), %v1069_v3 }
   0xa   : > { %1074 = vmatprep.subr.bf16.mxu0 (!%p184_p2), %v1073_v5  ;;  %1090 = vmatprep.subr.bf16.mxu1 (!%p184_p2), %v1073_v5 }
   0xd   : > { %s1402_s26 = smov (!%p207_p3, %s896_s26), 127  ;;  %1076 = vmatpush3.bf16.msra.mxu0 %v1073_v5  ;;  %1093 = vmatpush3.bf16.msra.mxu1 %v1073_v5  ;;  %vm1115_vm5 = vmmov (!%p932_p4), 0   ;;  %vm789_vm6 = vcmask (!%p932_p4), 523264  }
   0xe   : > { %s897_s29 = sshll.u32 %s1402_s26, 3  ;;  %995 = vmatprep.subr.msk.mxu0 %vm351_vm1, %v249_v6  ;;  %1091 = vmatprep.subr.msk.mxu1 %vm351_vm1, %v249_v6 }
   0xf   : > { %s1176_s9 = scalar_lea.vmem %s1395_s0, %s897_s29 }
  0x10   : > { %v213_v7 = vld [vmem:[%s1176_s9] sm:$0xff]  ;;  %v214_v8 = vld [vmem:[%s1176_s9 + $0x8] sm:$0xff]  ;;  %v215_v9 = vld [vmem:[%s1176_s9 + $0x10] sm:$0xff] }
  0x11   : > { %997 = vmatprep.mubr.msk.f32.mxu0 %vm254_vm0, %v213_v7  ;;  %996 = vmatpush3.msk.msra.mxu0 %vm351_vm1, %v249_v6  ;;  %v229_v10 = vld [vmem:[%s1176_s9 + $0x80] sm:$0xff]  ;;  %v230_v11 = vld [vmem:[%s1176_s9 + $0x88] sm:$0xff]  ;;  %v231_v12 = vld [vmem:[%s1176_s9 + $0x90] sm:$0xff] }
  0x12   : > { %998 = vmatmul.mubr.msk.f32.vlgmr.msra.gmra.mrb[0].mxu0 %vm254_vm0, %v214_v8  ;;  %1094 = vmatpush3.msk.msra.mxu1 %vm351_vm1, %v249_v6  ;;  %v216_v13 = vld [vmem:[%s1176_s9 + $0x18] sm:$0xff]  ;;  %v217_v14 = vld [vmem:[%s1176_s9 + $0x20] sm:$0xff]  ;;  %v218_v17 = vld [vmem:[%s1176_s9 + $0x28] sm:$0xff] }
  0x13   : > { %1000 = vmatprep.mubr.msk.f32.mxu0 %vm254_vm0, %v215_v9  ;;  %1021 = vmatprep.mubr.msk.f32.mxu1 %vm254_vm0, %v229_v10  ;;  %v232_v15 = vld [vmem:[%s1176_s9 + $0x98] sm:$0xff]  ;;  %v233_v16 = vld [vmem:[%s1176_s9 + $0xa0] sm:$0xff]  ;;  %v219_v18 = vld [vmem:[%s1176_s9 + $0x30] sm:$0xff] }
  0x14   : > { %1022 = vmatmul.mubr.msk.f32.vlgmr.msra.gmra.mrb[0].mxu1 %vm254_vm0, %v230_v11  ;;  %v234_v19 = vld [vmem:[%s1176_s9 + $0xa8] sm:$0xff]  ;;  %v235_v20 = vld [vmem:[%s1176_s9 + $0xb0] sm:$0xff]  ;;  %v220_v21 = vld [vmem:[%s1176_s9 + $0x38] sm:$0xff] }
  0x15   : > { %1024 = vmatprep.mubr.msk.f32.mxu1 %vm254_vm0, %v231_v12  ;;  %v221_v22 = vld [vmem:[%s1176_s9 + $0x40] sm:$0xff]  ;;  %v236_v23 = vld [vmem:[%s1176_s9 + $0xb8] sm:$0xff]  ;;  %v222_v25 = vld [vmem:[%s1176_s9 + $0x48] sm:$0xff] }
  0x16   : > { %1001 = vmatmul.mubr.msk.f32.gmra.mrb[2].mxu0 %vm254_vm0, %v216_v13  ;;  %v237_v24 = vld [vmem:[%s1176_s9 + $0xc0] sm:$0xff]  ;;  %v223_v26 = vld [vmem:[%s1176_s9 + $0x50] sm:$0xff]  ;;  %v238_v27 = vld [vmem:[%s1176_s9 + $0xc8] sm:$0xff] }
  0x17   : > { %1003 = vmatprep.mubr.msk.f32.mxu0 %vm254_vm0, %v217_v14  ;;  %v239_v28 = vld [vmem:[%s1176_s9 + $0xd0] sm:$0xff]  ;;  %v224_v29 = vld [vmem:[%s1176_s9 + $0x58] sm:$0xff]  ;;  %v225_v30 = vld [vmem:[%s1176_s9 + $0x60] sm:$0xff] }
  0x18   : > { %1025 = vmatmul.mubr.msk.f32.gmra.mrb[2].mxu1 %vm254_vm0, %v232_v15  ;;  %v240_v31 = vld [vmem:[%s1176_s9 + $0xd8] sm:$0xff]  ;;  %v241_v32 = vld [vmem:[%s1176_s9 + $0xe0] sm:$0xff]  ;;  %v226_v33 = vld [vmem:[%s1176_s9 + $0x68] sm:$0xff] }
  0x19   : > { %1027 = vmatprep.mubr.msk.f32.mxu1 %vm254_vm0, %v233_v16  ;;  %v227_v34 = vld [vmem:[%s1176_s9 + $0x70] sm:$0xff]  ;;  %v242_v35 = vld [vmem:[%s1176_s9 + $0xe8] sm:$0xff]  ;;  %v228_v37 = vld [vmem:[%s1176_s9 + $0x78] sm:$0xff] }
  0x1a   : > { %1004 = vmatmul.mubr.msk.f32.gmra.mrb[4].mxu0 %vm254_vm0, %v218_v17  ;;  %v243_v36 = vld [vmem:[%s1176_s9 + $0xf0] sm:$0xff]  ;;  %v244_v38 = vld [vmem:[%s1176_s9 + $0xf8] sm:$0xff] }
  0x1b   : > { %1006 = vmatprep.mubr.msk.f32.mxu0 %vm254_vm0, %v219_v18 }
  0x1c   : > { %1028 = vmatmul.mubr.msk.f32.gmra.mrb[4].mxu1 %vm254_vm0, %v234_v19 }
  0x1d   : > { %1030 = vmatprep.mubr.msk.f32.mxu1 %vm254_vm0, %v235_v20 }
  0x1e   : > { %1007 = vmatmul.mubr.msk.f32.gmra.mrb[6].mxu0 %vm254_vm0, %v220_v21 }
  0x1f   : > { %1009 = vmatprep.mubr.msk.f32.mxu0 %vm254_vm0, %v221_v22 }
  0x20   : > { %1031 = vmatmul.mubr.msk.f32.gmra.mrb[6].mxu1 %vm254_vm0, %v236_v23 }
  0x21   : > { %1033 = vmatprep.mubr.msk.f32.mxu1 %vm254_vm0, %v237_v24 }
  0x22   : > { %1010 = vmatmul.mubr.msk.f32.gmra.mrb[8].mxu0 %vm254_vm0, %v222_v25 }
  0x23   : > { %1012 = vmatprep.mubr.msk.f32.mxu0 %vm254_vm0, %v223_v26 }
  0x24   : > { %1034 = vmatmul.mubr.msk.f32.gmra.mrb[8].mxu1 %vm254_vm0, %v238_v27 }
  0x25   : > { %1036 = vmatprep.mubr.msk.f32.mxu1 %vm254_vm0, %v239_v28 }
  0x26   : > { %1013 = vmatmul.mubr.msk.f32.gmra.mrb[10].mxu0 %vm254_vm0, %v224_v29 }
  0x27   : > { %1015 = vmatprep.mubr.msk.f32.mxu0 %vm254_vm0, %v225_v30 }
  0x28   : > { %1037 = vmatmul.mubr.msk.f32.gmra.mrb[10].mxu1 %vm254_vm0, %v240_v31 }
  0x29   : > { %1039 = vmatprep.mubr.msk.f32.mxu1 %vm254_vm0, %v241_v32 }
  0x2a   : > { %1016 = vmatmul.mubr.msk.f32.gmra.mrb[12].mxu0 %vm254_vm0, %v226_v33 }
  0x2b   : > { %1018 = vmatprep.mubr.msk.f32.mxu0 %vm254_vm0, %v227_v34 }
  0x2c   : > { %1040 = vmatmul.mubr.msk.f32.gmra.mrb[12].mxu1 %vm254_vm0, %v242_v35 }
  0x2d   : > { %1042 = vmatprep.mubr.msk.f32.mxu1 %vm254_vm0, %v243_v36 }
  0x2e   : > { %1019 = vmatmul.mubr.msk.f32.gmra.mrb[14].mxu0 %vm254_vm0, %v228_v37 }
  0x30   : > { %1043 = vmatmul.mubr.msk.f32.gmra.mrb[14].mxu1 %vm254_vm0, %v244_v38 }
  0xe5   : > { %v999_v40 = vpop.f32.mrb[0].mxu0 }
  0xe6   : > { %v427_v41 = vadd.f32 %v999_v40, %v1245_v39  ;;  %v421_v42 = vpop.f32.mrb[1].mxu0 }
  0xe7   : > { %v422_v43 = vadd.f32 %v1245_v39, %v421_v42  ;;  %v1249_v44 = vpop.f32.mrb[0].mxu1 }
  0xe8   : > { %v581_v45 = vmax.f32 %v427_v41, 0.0  ;;  %v1251_v46 = vpop.f32.mrb[1].mxu1 }
  0xe9   : > { %v580_v47 = vmax.f32 %v422_v43, 0.0  ;;  %v1002_v48 = vpop.f32.mrb[2].mxu0 }
  0xea   : > { %v614_v49 = vsel %vm612_vm2, %v581_v45, 0.0  ;;  %v437_v50 = vadd.f32 %v1002_v48, %v1245_v39  ;;  %v431_v51 = vpop.f32.mrb[3].mxu0 }
  0xeb   : > { %v613_v52 = vsel %vm612_vm2, %v580_v47, 0.0  ;;  %v432_v53 = vadd.f32 %v1245_v39, %v431_v51  ;;  %v1257_v54 = vpop.f32.mrb[2].mxu1 }
  0xec   : > { %v615_v55 = vadd.f32 %v614_v49, %v613_v52  ;;  %v1259_v56 = vpop.f32.mrb[3].mxu1  ;;  %v583_v57 = vmax.f32 %v437_v50, 0.0 }
  0xed   : > { %v582_v58 = vmax.f32 %v432_v53, 0.0  ;;  %v1005_v59 = vpop.f32.mrb[4].mxu0  ;;  %v502_v53 = vadd.f32 %v1245_v39, %v1251_v46  ;;  %v507_v46 = vadd.f32 %v1249_v44, %v1245_v39 }
  0xee   : > { %v447_v60 = vadd.f32 %v1005_v59, %v1245_v39  ;;  %v441_v61 = vpop.f32.mrb[5].mxu0  ;;  %v618_v3 = vsel %vm612_vm2, %v583_v57, 0.0 }
  0xef   : > { %v616_v62 = vsel %vm612_vm2, %v582_v58, 0.0  ;;  %v442_v63 = vadd.f32 %v1245_v39, %v441_v61  ;;  %v1264_v0 = vpop.f32.mrb[4].mxu1 }
  0xf0   : > { %v617_v1 = vadd.f32 %v616_v62, %v615_v55  ;;  %v1266_v2 = vpop.f32.mrb[5].mxu1  ;;  %v585_v4 = vmax.f32 %v447_v60, 0.0 }
  0xf1   : > { %v584_v5 = vmax.f32 %v442_v63, 0.0  ;;  %v1008_v6 = vpop.f32.mrb[6].mxu0 }
  0xf2   : > { %v619_v7 = vadd.f32 %v618_v3, %v617_v1  ;;  %v457_v8 = vadd.f32 %v1008_v6, %v1245_v39  ;;  %v451_v9 = vpop.f32.mrb[7].mxu0  ;;  %v622_v15 = vsel %vm612_vm2, %v585_v4, 0.0  ;;  %v596_v6 = vmax.f32 %v502_v53, 0.0 }
  0xf3   : > { %v620_v10 = vsel %vm612_vm2, %v584_v5, 0.0  ;;  %v452_v11 = vadd.f32 %v1245_v39, %v451_v9  ;;  %v1272_v12 = vpop.f32.mrb[6].mxu1 }
  0xf4   : > { %v621_v13 = vadd.f32 %v620_v10, %v619_v7  ;;  %v1274_v14 = vpop.f32.mrb[7].mxu1  ;;  %v587_v16 = vmax.f32 %v457_v8, 0.0  ;;  %v644_v44 = vsel %vm612_vm2, %v596_v6, 0.0 }
  0xf5   : > { %v586_v17 = vmax.f32 %v452_v11, 0.0  ;;  %v1011_v18 = vpop.f32.mrb[8].mxu0  ;;  %v512_v11 = vadd.f32 %v1245_v39, %v1259_v56  ;;  %v527_v56 = vadd.f32 %v1264_v0, %v1245_v39 }
  0xf6   : > { %v623_v19 = vadd.f32 %v622_v15, %v621_v13  ;;  %v467_v20 = vadd.f32 %v1011_v18, %v1245_v39  ;;  %v461_v21 = vpop.f32.mrb[9].mxu0  ;;  %v626_v27 = vsel %vm612_vm2, %v587_v16, 0.0  ;;  %v517_v18 = vadd.f32 %v1257_v54, %v1245_v39 }
  0xf7   : > { %v624_v22 = vsel %vm612_vm2, %v586_v17, 0.0  ;;  %v462_v23 = vadd.f32 %v1245_v39, %v461_v21  ;;  %v1280_v24 = vpop.f32.mrb[8].mxu1  ;;  %v597_v17 = vmax.f32 %v507_v46, 0.0  ;;  %v522_v21 = vadd.f32 %v1245_v39, %v1266_v2 }
  0xf8   : > { %v625_v25 = vadd.f32 %v624_v22, %v623_v19  ;;  %v1282_v26 = vpop.f32.mrb[9].mxu1  ;;  %v589_v28 = vmax.f32 %v467_v20, 0.0  ;;  %v598_v20 = vmax.f32 %v512_v11, 0.0  ;;  %v532_v54 = vadd.f32 %v1245_v39, %v1274_v14 }
  0xf9   : > { %v588_v29 = vmax.f32 %v462_v23, 0.0  ;;  %v1014_v30 = vpop.f32.mrb[10].mxu0  ;;  %v542_v0 = vadd.f32 %v1245_v39, %v1282_v26  ;;  %v547_v14 = vadd.f32 %v1280_v24, %v1245_v39 }
  0xfa   : > { %v627_v31 = vadd.f32 %v626_v27, %v625_v25  ;;  %v477_v32 = vadd.f32 %v1014_v30, %v1245_v39  ;;  %v471_v33 = vpop.f32.mrb[11].mxu0  ;;  %v630_v40 = vsel %vm612_vm2, %v589_v28, 0.0  ;;  %v599_v25 = vmax.f32 %v517_v18, 0.0 }
  0xfb   : > { %v628_v34 = vsel %vm612_vm2, %v588_v29, 0.0  ;;  %v472_v35 = vadd.f32 %v1245_v39, %v471_v33  ;;  %v1288_v36 = vpop.f32.mrb[10].mxu1  ;;  %v646_v27 = vsel %vm612_vm2, %v597_v17, 0.0  ;;  %v648_v28 = vsel %vm612_vm2, %v598_v20, 0.0 }
  0xfc   : > { %v629_v37 = vadd.f32 %v628_v34, %v627_v31  ;;  %v1290_v38 = vpop.f32.mrb[11].mxu1  ;;  %v591_v41 = vmax.f32 %v477_v32, 0.0  ;;  %v600_v29 = vmax.f32 %v522_v21, 0.0  ;;  %v650_v31 = vsel %vm612_vm2, %v599_v25, 0.0 }
  0xfd   : > { %v590_v42 = vmax.f32 %v472_v35, 0.0  ;;  %v1017_v43 = vpop.f32.mrb[12].mxu0  ;;  %v601_v33 = vmax.f32 %v527_v56, 0.0  ;;  %v537_v34 = vadd.f32 %v1272_v12, %v1245_v39  ;;  %v602_v35 = vmax.f32 %v532_v54, 0.0  ;;  %v777_v54 = vld [vmem:[%s1398_s3] sm:$0xff] (!%p932_p4) }
  0xfe   : > { %v631_v45 = vadd.f32 %v630_v40, %v629_v37  ;;  %v487_v47 = vadd.f32 %v1017_v43, %v1245_v39  ;;  %v481_v48 = vpop.f32.mrb[13].mxu0  ;;  %v634_v57 = vsel %vm612_vm2, %v591_v41, 0.0  ;;  %v652_v2 = vsel %vm612_vm2, %v600_v29, 0.0 }
  0xff   : > { %v632_v49 = vsel %vm612_vm2, %v590_v42, 0.0  ;;  %v482_v50 = vadd.f32 %v1245_v39, %v481_v48  ;;  %v1296_v51 = vpop.f32.mrb[12].mxu1  ;;  %v654_v40 = vsel %vm612_vm2, %v601_v33, 0.0  ;;  %v603_v42 = vmax.f32 %v537_v34, 0.0 }
 0x100   : > { %v633_v52 = vadd.f32 %v632_v49, %v631_v45  ;;  %v561_v55 = vpop.f32.mrb[13].mxu1  ;;  %v593_v58 = vmax.f32 %v487_v47, 0.0  ;;  %v656_v43 = vsel %vm612_vm2, %v602_v35, 0.0  ;;  %v604_v45 = vmax.f32 %v542_v0, 0.0  ;;  %v781_v35 = vld [vmem:[%s1398_s3 + $0x20] sm:$0xff] (!%p932_p4)  ;;  %v782_v0 = vld [vmem:[%s1398_s3 + $0x28] sm:$0xff] (!%p932_p4) }
 0x101   : > { %v592_v59 = vmax.f32 %v482_v50, 0.0  ;;  %v1020_v60 = vpop.f32.mrb[14].mxu0  ;;  %v552_v47 = vadd.f32 %v1245_v39, %v1290_v38  ;;  %v605_v49 = vmax.f32 %v547_v14, 0.0  ;;  %v557_v26 = vadd.f32 %v1288_v36, %v1245_v39 }
 0x102   : > { %v635_v61 = vadd.f32 %v634_v57, %v633_v52  ;;  %v497_v62 = vadd.f32 %v1020_v60, %v1245_v39  ;;  %v491_v63 = vpop.f32.mrb[15].mxu0  ;;  %v638_v8 = vsel %vm612_vm2, %v593_v58, 0.0  ;;  %v658_v50 = vsel %vm612_vm2, %v603_v42, 0.0  ;;  %v933_v42 = vld [vmem:[%s1399_s4 + $0x1] ss:$0 sm:$0xff] (!%p932_p4) }
 0x103   : > { %v636_v1 = vsel %vm612_vm2, %v592_v59, 0.0  ;;  %v492_v3 = vadd.f32 %v1245_v39, %v491_v63  ;;  %v1304_v4 = vpop.f32.mrb[14].mxu1  ;;  %v660_v52 = vsel %vm612_vm2, %v604_v45, 0.0  ;;  %v606_v53 = vmax.f32 %v552_v47, 0.0 }
 0x104   : > { %v637_v5 = vadd.f32 %v636_v1, %v635_v61  ;;  %v571_v7 = vpop.f32.mrb[15].mxu1  ;;  %v595_v9 = vmax.f32 %v497_v62, 0.0  ;;  %v562_v24 = vadd.f32 %v1245_v39, %v561_v55  ;;  %v662_v58 = vsel %vm612_vm2, %v605_v49, 0.0 }
 0x105   : > { %v594_v10 = vmax.f32 %v492_v3, 0.0  ;;  %v607_v60 = vmax.f32 %v557_v26, 0.0  ;;  %v664_v38 = vsel %vm612_vm2, %v606_v53, 0.0  ;;  %v567_v61 = vadd.f32 %v1296_v51, %v1245_v39 }
 0x106   : > { %v639_v13 = vadd.f32 %v638_v8, %v637_v5  ;;  %v642_v19 = vsel %vm612_vm2, %v595_v9, 0.0  ;;  %v608_v62 = vmax.f32 %v562_v24, 0.0  ;;  %v572_v36 = vadd.f32 %v1245_v39, %v571_v7 }
 0x107   : > { %v640_v15 = vsel %vm612_vm2, %v594_v10, 0.0  ;;  %v666_v1 = vsel %vm612_vm2, %v607_v60, 0.0  ;;  %v609_v5 = vmax.f32 %v567_v61, 0.0  ;;  %v577_v46 = vadd.f32 %v1304_v4, %v1245_v39 }
 0x108   : > { %v641_v16 = vadd.f32 %v640_v15, %v639_v13  ;;  %v668_v55 = vsel %vm612_vm2, %v608_v62, 0.0  ;;  %v610_v6 = vmax.f32 %v572_v36, 0.0  ;;  %v685_v21 = vstv %s1153_s19 }
 0x109   : > { %v670_v10 = vsel %vm612_vm2, %v609_v5, 0.0  ;;  %v611_v51 = vmax.f32 %v577_v46, 0.0  ;;  %v1114_v29 = vmov (!%p932_p4), 0.0  }
 0x10a   : > { %v643_v22 = vadd.f32 %v642_v19, %v641_v16  ;;  %v672_v11 = vsel %vm612_vm2, %v610_v6, 0.0  ;;  %v683_v19 = vlaneseq  ;;  %1045 = vmatprep.subr.mxu0 (!%p932_p4), %v1114_v29  ;;  %1047 = vmatprep.mubr.msk.f32.mxu0 (!%p932_p4), %vm1115_vm5, %v1114_v29 }
 0x10b   : > { %v674_v15 = vsel %vm612_vm2, %v611_v51, 0.0  ;;  %1066 = vmatprep.mubr.msk.f32.mxu1 (!%p932_p4), %vm1115_vm5, %v1114_v29 }
 0x10c   : > { %v645_v23 = vadd.f32 %v644_v44, %v643_v22  ;;  %v684_v39 = vshrl.u32 %v683_v19, 7 }
 0x10e   : > { %v647_v30 = vadd.f32 %v646_v27, %v645_v23  ;;  %vm686_vm3 = vcmp.eq.s32.totalorder %v684_v39, %v685_v21  ;;  %v687_v23 = vld [vmem:[#allocation2] sm:$0xf] }
 0x10f   : > { %v697_v27 = vld [vmem:[%s1397_s2] sm:$0xff] (!%p932_p4) }
 0x110   : > { %v649_v32 = vadd.f32 %v648_v28, %v647_v30  ;;  %v778_v30 = vld [vmem:[%s1398_s3 + $0x8] sm:$0xff] (!%p932_p4)  ;;  %1046 = vmatpush3.msra.mxu0 (!%p932_p4), %v697_v27 }
 0x111   : > { %v1078_v33 = vpack.c.bf16 (!%p932_p4), %v778_v30, %v777_v54 }
 0x112   : > { %v651_v37 = vadd.f32 %v650_v31, %v649_v32  ;;  %v779_v31 = vld [vmem:[%s1398_s3 + $0x10] sm:$0xff] (!%p932_p4)  ;;  %v1116_v32 = vmov (!%p932_p4), 0.0|0.0  }
 0x113   : > { %1077 = vmatprep.subr.bf16.mxu1 (!%p932_p4), %v1116_v32 }
 0x114   : > { %v653_v41 = vadd.f32 %v652_v2, %v651_v37  ;;  %v780_v2 = vld [vmem:[%s1398_s3 + $0x18] sm:$0xff] (!%p932_p4)  ;;  %1079 = vmatpush3.bf16.msra.mxu1 (!%p932_p4), %v1078_v33  ;;  %v1084_v37 = vpack.c.bf16 (!%p932_p4), %v782_v0, %v781_v35 }
 0x115   : > { %v1081_v34 = vpack.c.bf16 (!%p932_p4), %v780_v2, %v779_v31  ;;  %1080 = vmatprep.subr.bf16.mxu1 (!%p932_p4), %v1116_v32 }
 0x116   : > { %v655_v48 = vadd.f32 %v654_v40, %v653_v41  ;;  %v783_v40 = vld [vmem:[%s1398_s3 + $0x30] sm:$0xff] (!%p932_p4)  ;;  %v784_v41 = vld [vmem:[%s1398_s3 + $0x38] sm:$0xff] (!%p932_p4) }
 0x117   : > { %v1087_v14 = vpack.c.bf16 (!%p932_p4), %v784_v41, %v783_v40 }
 0x118   : > { %v657_v12 = vadd.f32 %v656_v43, %v655_v48  ;;  %1082 = vmatpush3.bf16.msra.mxu1 (!%p932_p4), %v1081_v34 }
 0x119   : > { %1083 = vmatprep.subr.bf16.mxu1 (!%p932_p4), %v1116_v32 }
 0x11a   : > { %v659_v57 = vadd.f32 %v658_v50, %v657_v12  ;;  %v935_v12 = vld [vmem:[%s1399_s4 + $0x2] ss:$0 sm:$0xff] (!%p932_p4) }
 0x11c   : > { %v661_v59 = vadd.f32 %v660_v52, %v659_v57  ;;  %1085 = vmatpush3.bf16.msra.mxu1 (!%p932_p4), %v1084_v37 }
 0x11d   : > { %1086 = vmatprep.subr.bf16.mxu1 (!%p932_p4), %v1116_v32 }
 0x11e   : > { %v663_v63 = vadd.f32 %v662_v58, %v661_v59 }
 0x120   : > { %v665_v3 = vadd.f32 %v664_v38, %v663_v63  ;;  %1088 = vmatpush3.bf16.msra.mxu1 (!%p932_p4), %v1087_v14 }
 0x122   : > { %v667_v8 = vadd.f32 %v666_v1, %v665_v3 }
 0x124   : > { %v669_v9 = vadd.f32 %v668_v55, %v667_v8 }
 0x126   : > { %v671_v7 = vadd.f32 %v670_v10, %v669_v9 }
 0x128   : > { %v673_v13 = vadd.f32 %v672_v11, %v671_v7 }
 0x12a   : > { %v675_v16 = vadd.f32 %v674_v15, %v673_v13 }
 0x12c   : > { %v676_v17 = vrot.slane %v675_v16, 4 }
 0x12e   : > { %v677_v18 = vadd.f32 %v676_v17, %v675_v16 }
 0x130   : > { %v678_v44 = vrot.slane %v677_v18, 2 }
 0x132   : > { %v679_v20 = vadd.f32 %v678_v44, %v677_v18 }
 0x134   : > { %v680_v4 = vrot.slane %v679_v20, 1 }
 0x135   : > { %694 = sbr.rel (%p932_p4) target bundleno = 754 (0x2f2), region = 44 }
 0x136   : > { %v681_v22 = vadd.f32 %v680_v4, %v679_v20 }
 0x138   : > { %v682_v25 = vmul.f32 0.00390625, %v681_v22 }
 0x13a   : > { %v688_v56 = vsel %vm686_vm3, %v682_v25, %v687_v23 }
 0x13b   : > { %690 = vst.msk [vmem:[#allocation2] sm:$0xf] %vm689_vm4, %v688_v56 }
 0x142   : > { %v695_v28 = vld [vmem:[#allocation2] sm:$0xf] }
 0x143   : > { %1048 = vmatmul.mubr.msk.f32.vlgmr.msra.gmra.mrb[0].mxu0 %vm612_vm2, %v695_v28 }
 0x216   : > { %v771_v43 = vpop.f32.mrb[0].mxu0 }
 0x217   : > { %v772_v45 = vadd.f32 %v933_v42, %v771_v43  ;;  %v1049_v47 = vpop.f32.mrb[1].mxu0 }
 0x219   : > { %v775_v48 = vmax.f32 %v772_v45, 0.0 }
 0x21b   : > { %1067 = vmatmul.mubr.msk.f32.vlgmr.msra.gmra.mrb[0].mxu1 %vm789_vm6, %v775_v48 }
 0x2ee   : > { %v859_v49 = vpop.f32.mrb[0].mxu1 }
 0x2ef   : > { %v860_v26 = vadd.f32 %v935_v12, %v859_v49  ;;  %v1068_v50 = vpop.f32.mrb[1].mxu1 }
 0x2f1   : > { %863 = vst [vmem:[%s1400_s5] sm:$0xf] %v860_v26 }
 0x2f2 PF: > { %s15_s18 = sadd.s32 1, %s1112_s18  }
 0x2f3   : > { %p12_p5 = scmp.ge.s32.totalorder %s15_s18, 6  }
 0x2f5   :  { %14 = sbr.rel (!%p12_p5) target bundleno = 1 (0x1), region = 70 }

</bundles_post_ra>
